<compile_context>
chip_gen: v7x
topology: tpu7x:2x2x1
jax: 0.10.0
libtpu: 0.0.40
codegen_flags: <defaults>
</compile_context>

<pallas_src>
import functools

import jax
import jax.numpy as jnp
import numpy as np
from jax.experimental import pallas as pl
from jax.experimental.pallas import tpu as pltpu


def _round_up(x: int, m: int) -> int:
    return ((x + m - 1) // m) * m


def _device_kind() -> str:
    try:
        return jax.devices()[0].device_kind.lower()
    except Exception:  # pragma: no cover - defensive
        return ""


def _bilinear_weights_np(w_in: int, w_out: int) -> np.ndarray:
    """Host-built (w_in, w_out) f32 bilinear (align_corners=False) weights."""
    cols = np.arange(w_out, dtype=np.float64)
    scale = w_in / w_out
    src = np.clip((cols + 0.5) * scale - 0.5, 0.0, float(w_in - 1))
    i0 = np.floor(src).astype(np.int64)
    i1 = np.minimum(i0 + 1, w_in - 1)
    frac = (src - i0).astype(np.float32)
    m = np.zeros((w_in, w_out), dtype=np.float32)
    c = np.arange(w_out, dtype=np.int64)
    m[i0, c] += (1.0 - frac)
    m[i1, c] += frac
    return m


def _bilinear_width_matrix(w_in: int, w_out: int, w_pad: int) -> np.ndarray:
    """(w_in, w_pad) bf16 host constant; columns [w_out:w_pad] are zero pad.

    Columns are renormalized so the two bf16 taps of each output column sum to
    ~1, limiting the systematic intensity bias of the bf16 MXU path.
    """
    m = _bilinear_weights_np(w_in, w_out)
    m16 = m.astype(jnp.bfloat16).astype(np.float32)
    col_sum = m16.sum(axis=0, keepdims=True)
    col_sum[col_sum == 0.0] = 1.0
    m = m / col_sum
    if w_pad > w_out:
        m = np.pad(m, ((0, 0), (0, w_pad - w_out)))
    return np.asarray(m, dtype=jnp.bfloat16)


def _resize_matmul_kernel(x_ref, w_ref, o_ref):
    # x_ref: (TM, W_in) row tile; w_ref: (W_in, W_pad) resident bf16 weights;
    # o_ref: (TM, W_pad) lane-dense output tile.
    # Cast to bf16 in-kernel: MXU-native operands without an extra HBM pass.
    x = x_ref[...].astype(jnp.bfloat16)
    acc = jnp.dot(x, w_ref[...], preferred_element_type=jnp.float32)
    if jnp.issubdtype(o_ref.dtype, jnp.integer):
        acc = jnp.round(acc)          # round-to-nearest for integer images
    o_ref[...] = acc.astype(o_ref.dtype)


@functools.partial(jax.jit, static_argnums=(1,))
def _horizontal_resize(x: jax.Array, new_w: int) -> jax.Array:
    """Resize NCHW tensor `x` along W to `new_w` using a Pallas matmul kernel."""
    b, c, h, w_in = x.shape
    rows = b * c * h
    w_pad = _round_up(new_w, 128)           # lane-dense output width
    itemsize = x.dtype.itemsize

    kind = _device_kind()
    is_v7 = "v7" in kind

    # Host-baked constant weights (no device-side prologue).
    weights = _bilinear_width_matrix(w_in, new_w, w_pad)

    # Flatten rows; NO row padding -- Pallas masks the ragged last block.
    x2 = x.reshape(rows, w_in)

    # ---- VMEM accounting (lane-rounded, includes in-kernel temporaries) ----
    w_in_lanes = _round_up(w_in, 128)
    weight_bytes = _round_up(w_in, 16) * w_pad * 2          # bf16 weights
    use_single_buffer_weights = hasattr(pl, "Buffered") and weight_bytes > (4 << 20)
    weight_buffers = 1 if use_single_buffer_weights else 2
    per_row_bytes = (
        2 * w_in_lanes * itemsize       # double-buffered input tiles
        + 2 * w_pad * itemsize          # double-buffered output tiles
        + w_in_lanes * 2                # in-kernel bf16 copy of the x tile
        + w_pad * 4                     # f32 matmul accumulator
    )
    tile_budget = (40 << 20) if is_v7 else (80 << 20)
    tm = (tile_budget - weight_buffers * weight_bytes) // per_row_bytes
    # Cap at 1024 rows: HBM roofline saturates well before that; bigger tiles
    # only collapse the grid and inflate VMEM pressure.
    tm = min(tm, 1024, _round_up(rows, 32))
    tm = max(32, (tm // 32) * 32)       # multiple of 32 covers 8/16/32-bit dtypes

    if is_v7:
        # Ensure several (preferably >=8, even) grid steps so the two v7x
        # TensorCores split the "parallel" row axis evenly.
        max_steps = pl.cdiv(rows, 32)
        target = min(max(8, pl.cdiv(rows, tm)), max(1, max_steps))
        if target % 2 and target > 1:
            target += 1
        tm = max(32, min(tm, _round_up(pl.cdiv(rows, target), 32)))

    grid = (pl.cdiv(rows, tm),)

    need = weight_buffers * weight_bytes + tm * per_row_bytes
    vmem_cap = (48 << 20) if is_v7 else (100 << 20)
    vmem_limit = int(min(vmem_cap, max(16 << 20, need * 5 // 4)))

    # ---- Block specs ----
    x_spec = pl.BlockSpec((tm, w_in), lambda i: (i, 0))          # row tile
    o_spec = pl.BlockSpec((tm, w_pad), lambda i: (i, 0))         # lane-dense out
    if use_single_buffer_weights:
        try:
            w_spec = pl.BlockSpec((w_in, w_pad), lambda i: (0, 0),
                                  pipeline_mode=pl.Buffered(1))  # resident, no 2x buf
        except TypeError:  # older BlockSpec without pipeline_mode
            w_spec = pl.BlockSpec((w_in, w_pad), lambda i: (0, 0))
    else:
        w_spec = pl.BlockSpec((w_in, w_pad), lambda i: (0, 0))

    cost = pl.CostEstimate(
        flops=2 * rows * w_in * w_pad,
        transcendentals=0,
        bytes_accessed=rows * (w_in + new_w) * itemsize + weight_bytes,
    )

    out2 = pl.pallas_call(
        _resize_matmul_kernel,
        out_shape=jax.ShapeDtypeStruct((rows, w_pad), x.dtype),
        grid=grid,
        in_specs=[x_spec, w_spec],
        out_specs=o_spec,
        compiler_params=pltpu.CompilerParams(
            dimension_semantics=("parallel",),   # megacore split on v7x
            vmem_limit_bytes=vmem_limit,
        ),
        cost_estimate=cost,
    )(x2, weights)

    if w_pad != new_w:
        # TODO(synk): for widths far from a 128 multiple, an out_spec whose
        # last dim is new_w (masked vst) may beat this extra slice pass;
        # keep the lane-dense path as the default.
        out2 = out2[:, :new_w]
    return out2.reshape(b, c, h, new_w)


class HorizontalLimit:
    """JAX/Pallas equivalent of the PyTorch HorizontalLimit transform."""

    def __init__(self, min_: int, max_: int, interpolation=None):
        self.min_ = min_
        self.max_ = max_
        self.interpolation = interpolation  # bilinear is always used in-kernel

    def __call__(self, image: jax.Array) -> jax.Array:
        # image: NCHW
        w = image.shape[-1]
        if w > self.max_:
            return _horizontal_resize(image, self.max_)
        elif self.min_ > w:
            return _horizontal_resize(image, self.min_)
        return image


if __name__ == "__main__":
    key = jax.random.PRNGKey(0)
    # B=2, C=4, H=16, W=16; width limit [8, 12] -> width 16 > 12 -> resize to 12
    x = jax.random.uniform(key, (2, 4, 16, 16), dtype=jnp.float32)

    transform = HorizontalLimit(min_=8, max_=12, interpolation=None)
    out = jax.block_until_ready(transform(x))
    assert out.shape == (2, 4, 16, 12), out.shape

    # Validate the bf16 MXU path against an exact f32 host reference.
    ref_m = _bilinear_weights_np(16, 12)
    ref = (np.asarray(x).reshape(-1, 16) @ ref_m).reshape(2, 4, 16, 12)
    max_err = float(np.max(np.abs(np.asarray(out) - ref)))
    assert max_err < 5e-2, max_err

    # Pass-through branch (min_ <= W <= max_): no resize, no copy.
    transform_noop = HorizontalLimit(min_=8, max_=32)
    out_same = jax.block_until_ready(transform_noop(x))
    assert out_same.shape == x.shape

    # Upscale branch (W < min_): 16 -> 24.
    transform_up = HorizontalLimit(min_=24, max_=64)
    out_up = jax.block_until_ready(transform_up(x))
    assert out_up.shape == (2, 4, 16, 24), out_up.shape

    print("KERNEL_OK")
</pallas_src>

<mosaic_0001>
module attributes {stable_mosaic.version = 11 : i64} {
  func.func @_resize_matmul_kernel(%arg0: i32, %arg1: memref<128x16xf32, #tpu.memory_space<vmem>>, %arg2: memref<16x128xbf16, #tpu.memory_space<vmem>>, %arg3: memref<128x128xf32, #tpu.memory_space<vmem>>) attributes {dimension_semantics = [#tpu.dimension_semantics<parallel>], iteration_bounds = array<i64: 1>, scalar_prefetch = 0 : i64, scratch_operands = 0 : i64, tpu.core_type = #tpu.core_type<tc>, window_params = [{transform_indices = @transform_0, window_bounds = array<i64: 128, 16>}, {pipeline_mode = #tpu.pipeline_mode<synchronous>, transform_indices = @transform_1, window_bounds = array<i64: 16, 128>}, {transform_indices = @transform_2, window_bounds = array<i64: 128, 128>}]} {
    %c0 = arith.constant 0 : index
    %c0_0 = arith.constant 0 : index
    %0 = vector.load %arg1[%c0, %c0_0] : memref<128x16xf32, #tpu.memory_space<vmem>>, vector<128x16xf32>
    %1 = arith.truncf %0 : vector<128x16xf32> to vector<128x16xbf16>
    %c0_1 = arith.constant 0 : index
    %c0_2 = arith.constant 0 : index
    %2 = vector.load %arg2[%c0_1, %c0_2] : memref<16x128xbf16, #tpu.memory_space<vmem>>, vector<16x128xbf16>
    %cst = arith.constant dense<0.000000e+00> : vector<128x128xf32>
    %3 = tpu.matmul %1, %2, %cst {dimension_numbers = #tpu.dot_dimension_numbers<[1], [0], [0], [1], [0, 0, 1, 1], [], []>} : vector<128x16xbf16>, vector<16x128xbf16>, vector<128x128xf32> -> vector<128x128xf32>
    %c0_3 = arith.constant 0 : index
    %c0_4 = arith.constant 0 : index
    %4 = vector.load %arg3[%c0_3, %c0_4] : memref<128x128xf32, #tpu.memory_space<vmem>>, vector<128x128xf32>
    tpu.vector_store %arg3[%c0_3, %c0_4], %3 {strides = array<i32>} : memref<128x128xf32, #tpu.memory_space<vmem>>, vector<128x128xf32>,
    return
  }
  func.func @transform_0(%arg0: i32) -> (i32, i32) {
    %c0_i32 = arith.constant 0 : i32
    %c0_i32_0 = arith.constant 0 : i32
    return %arg0, %c0_i32 : i32, i32
  }
  func.func @transform_1(%arg0: i32) -> (i32, i32) {
    %c0_i32 = arith.constant 0 : i32
    %c0_i32_0 = arith.constant 0 : i32
    %c0_i32_1 = arith.constant 0 : i32
    return %c0_i32, %c0_i32_0 : i32, i32
  }
  func.func @transform_2(%arg0: i32) -> (i32, i32) {
    %c0_i32 = arith.constant 0 : i32
    %c0_i32_0 = arith.constant 0 : i32
    return %arg0, %c0_i32 : i32, i32
  }
}

</mosaic_0001>

<bundles_post_ra>
// kernel: _horizontal_resize.1
= control target key start
LH: loop header
LB: loop body
LE: loop exit
PB: predicated region body
PF: predicated region fallthrough
CT: control target
= control target key end

     0   :  { %7 = vsyncpa [#allocation3], 0  ;;  %s267_s9 = smov [#allocation2]   ;;  %s356_s0 = inlined_call_operand.hbm [shape: f32[128,16], index: 0, kind: input, shape index: {}]   ;;  %s357_s1 = inlined_call_operand.vmem [shape: bf16[16,128], index: 1, kind: input, shape index: {}]   ;;  %s358_s2 = inlined_call_operand.vmem [shape: f32[128,128], index: 2, kind: output, shape index: {}]  }
   0x1   :  { %s13_s10 = sshll.u32 %s267_s9, 4  ;;  %s243_s13 = scalar_lea.hbm %s356_s0, 2048  ;;  %s14_s10 = int_to_ptr.vmem [resolvable:$true] %s13_s10 }
   0x2   :  { %p244_p0 = scmp.ne.s32.totalorder %s356_s0, %s243_s13  ;;  %p247_p1 = scmp.lt.u32.totalorder %s243_s13, %s356_s0 }
   0x4   :  { %p249_p2 = pnand %p247_p1, %p244_p0 }
   0x6   :  { %252 = shalt.err (!%p249_p2)
}
   0x7   :  { %s253_s18 = scalar_lea.vmem %s14_s10, 2048  ;;  %p258_p4 = scmp.lt.s32.totalorder %s14_s10, %s14_s10 }
   0x8   :  { %p254_p3 = scmp.ne.s32.totalorder %s14_s10, %s253_s18  ;;  %p259_p5 = scmp.lt.s32.totalorder %s253_s18, %s253_s18 }
   0xa   :  { %p260_p6 = por %p259_p5, %p258_p4 }
   0xc   :  { %p261_p7 = pnand %p260_p6, %p254_p3 }
   0xe   :  { %264 = shalt.err (!%p261_p7)
}
   0xf   :  { %s268_s19 = smov 128   ;;  %s269_s20 = smov 8  }
  0x10   :  { %19 = dma.hbm_to_vmem [thread:$0]  %s356_s0, 2048, %s14_s10, [#allocation3], %s268_s19, %s268_s19, %s269_s20  }
  0x11   :  { %265 = dma.done.wait [#allocation3], 2048  }
  0x12   :  { %266 = vsyncadd [#allocation3], 4294965248  ;;  %v242_v0 = vld [vmem:[%s357_s1] sm:$0xff]   ;;  %v27_v2 = vld [vmem:[#allocation2 + $0x8] sm:$0xff]  ;;  %vm58_vm0 = vcmask 130048  }
  0x13   :  { %v26_v1 = vld [vmem:[#allocation2] sm:$0xff]  ;;  %219 = vmatprep.subr.bf16.mxu0 %v242_v0  ;;  %237 = vmatprep.subr.bf16.mxu1 %v242_v0  ;;  %v35_v5 = vld [vmem:[#allocation2 + $0x48] sm:$0xff]  ;;  %v28_v6 = vld [vmem:[#allocation2 + $0x10] sm:$0xff] }
  0x14   :  { %v34_v3 = vld [vmem:[#allocation2 + $0x40] sm:$0xff]  ;;  %v42_v4 = vpack.c.bf16 %v27_v2, %v26_v1  ;;  %v29_v7 = vld [vmem:[#allocation2 + $0x18] sm:$0xff]  ;;  %220 = vmatpush3.bf16.msra.mxu0 %v242_v0  ;;  %238 = vmatpush3.bf16.msra.mxu1 %v242_v0  ;;  %v36_v10 = vld [vmem:[#allocation2 + $0x50] sm:$0xff] }
  0x15   :  { %v46_v8 = vpack.c.bf16 %v35_v5, %v34_v3  ;;  %v43_v9 = vpack.c.bf16 %v29_v7, %v28_v6  ;;  %v37_v11 = vld [vmem:[#allocation2 + $0x58] sm:$0xff]  ;;  %v30_v12 = vld [vmem:[#allocation2 + $0x20] sm:$0xff]  ;;  %v31_v14 = vld [vmem:[#allocation2 + $0x28] sm:$0xff] }
  0x16   :  { %221 = vmatprep.mubr.msk.bf16.mxu0 %vm58_vm0, %v42_v4  ;;  %v47_v13 = vpack.c.bf16 %v37_v11, %v36_v10  ;;  %v38_v15 = vld [vmem:[#allocation2 + $0x60] sm:$0xff]  ;;  %v39_v16 = vld [vmem:[#allocation2 + $0x68] sm:$0xff]  ;;  %v44_v17 = vpack.c.bf16 %v31_v14, %v30_v12  ;;  %v32_v19 = vld [vmem:[#allocation2 + $0x30] sm:$0xff] }
  0x17   :  { %229 = vmatprep.mubr.msk.bf16.mxu1 %vm58_vm0, %v46_v8  ;;  %v48_v18 = vpack.c.bf16 %v39_v16, %v38_v15  ;;  %222 = vmatmul.mubr.msk.bf16.vlgmr.msra.gmra.mrb[0].mxu0 %vm58_vm0, %v43_v9  ;;  %v33_v20 = vld [vmem:[#allocation2 + $0x38] sm:$0xff]  ;;  %v40_v21 = vld [vmem:[#allocation2 + $0x70] sm:$0xff] }
  0x18   :  { %230 = vmatmul.mubr.msk.bf16.vlgmr.msra.gmra.mrb[0].mxu1 %vm58_vm0, %v47_v13  ;;  %225 = vmatprep.mubr.msk.bf16.mxu0 %vm58_vm0, %v44_v17  ;;  %v41_v22 = vld [vmem:[#allocation2 + $0x78] sm:$0xff]  ;;  %v45_v23 = vpack.c.bf16 %v33_v20, %v32_v19 }
  0x19   :  { %233 = vmatprep.mubr.msk.bf16.mxu1 %vm58_vm0, %v48_v18  ;;  %v49_v24 = vpack.c.bf16 %v41_v22, %v40_v21 }
  0x1f   :  { %226 = vmatmul.mubr.msk.bf16.gmra.mrb[4].mxu0 %vm58_vm0, %v45_v23 }
  0x20   :  { %234 = vmatmul.mubr.msk.bf16.gmra.mrb[4].mxu1 %vm58_vm0, %v49_v24 }
  0xea   :  { %v223_v25 = vpop.f32.mrb[0].mxu0 }
  0xeb   :  { %v231_v26 = vpop.f32.mrb[0].mxu1  ;;  %182 = vst [vmem:[%s358_s2 + $0x10] sm:$0xff] %v223_v25  ;;  %v117_v27 = vpop.f32.mrb[1].mxu0 }
  0xec   :  { %190 = vst [vmem:[%s358_s2 + $0x50] sm:$0xff] %v231_v26  ;;  %v149_v28 = vpop.f32.mrb[1].mxu1  ;;  %180 = vst [vmem:[%s358_s2] sm:$0xff] %v117_v27  ;;  %v224_v29 = vpop.f32.mrb[2].mxu0 }
  0xed   :  { %188 = vst [vmem:[%s358_s2 + $0x40] sm:$0xff] %v149_v28  ;;  %v232_v30 = vpop.f32.mrb[2].mxu1  ;;  %183 = vst [vmem:[%s358_s2 + $0x18] sm:$0xff] %v224_v29  ;;  %v120_v31 = vpop.f32.mrb[3].mxu0 }
  0xee   :  { %191 = vst [vmem:[%s358_s2 + $0x58] sm:$0xff] %v232_v30  ;;  %v152_v32 = vpop.f32.mrb[3].mxu1  ;;  %181 = vst [vmem:[%s358_s2 + $0x8] sm:$0xff] %v120_v31 }
  0xef   :  { %189 = vst [vmem:[%s358_s2 + $0x48] sm:$0xff] %v152_v32 }
  0xf2   :  { %v227_v33 = vpop.f32.mrb[4].mxu0 }
  0xf3   :  { %v235_v34 = vpop.f32.mrb[4].mxu1  ;;  %186 = vst [vmem:[%s358_s2 + $0x30] sm:$0xff] %v227_v33  ;;  %v133_v35 = vpop.f32.mrb[5].mxu0 }
  0xf4   :  { %194 = vst [vmem:[%s358_s2 + $0x70] sm:$0xff] %v235_v34  ;;  %v165_v36 = vpop.f32.mrb[5].mxu1  ;;  %184 = vst [vmem:[%s358_s2 + $0x20] sm:$0xff] %v133_v35  ;;  %v228_v37 = vpop.f32.mrb[6].mxu0 }
  0xf5   :  { %192 = vst [vmem:[%s358_s2 + $0x60] sm:$0xff] %v165_v36  ;;  %v236_v38 = vpop.f32.mrb[6].mxu1  ;;  %187 = vst [vmem:[%s358_s2 + $0x38] sm:$0xff] %v228_v37  ;;  %v136_v39 = vpop.f32.mrb[7].mxu0 }
  0xf6   :  { %195 = vst [vmem:[%s358_s2 + $0x78] sm:$0xff] %v236_v38  ;;  %v168_v40 = vpop.f32.mrb[7].mxu1  ;;  %185 = vst [vmem:[%s358_s2 + $0x28] sm:$0xff] %v136_v39 }
  0xf7   :  { %193 = vst [vmem:[%s358_s2 + $0x68] sm:$0xff] %v168_v40 }
  0xf8   :  { %200 = vsyncpa [#allocation3], 1 }

</bundles_post_ra>
